<compile_context>
chip_gen: v5e
topology: v5e:2x2
jax: 0.10.0
libtpu: 0.0.40
codegen_flags: <defaults>
</compile_context>

<pallas_src>
import functools

import jax
import jax.numpy as jnp
from jax import lax
from jax.experimental import pallas as pl
from jax.experimental.pallas import tpu as pltpu


def _choose_tile_k(kp, bp):
    """Lane tile along the sample axis: multiple of 128, as large as practical,
    never exceeding the axis; when the batch grid axis is trivial, prefer >=2
    K-blocks so the 'parallel' grid has work for both TensorCores."""
    if kp <= 128:
        return kp                                   # single full-extent block
    cands = [t for t in (2048, 1024, 512, 256, 128) if t <= kp]
    if bp == 1:
        for t in cands:                             # largest tile with >=2 blocks
            if (kp + t - 1) // t >= 2:
                return t
    return cands[0]


def _make_kernel(num_channels):
    m_total = num_channels

    def kernel(bias_ref, w_ref, x_ref, o_ref):
        # bias_ref: (1, 1)     composed normalization-offset term
        # w_ref:    (M, C, 1)  composed (scale * conv-taps * mean-pool) coefficients
        # x_ref:    (M, C, TK) raw input block, samples lane-dense
        # o_ref:    (1, TK)    classifier scores for TK samples
        acc = x_ref[0] * w_ref[0]                   # (C, TK); (C,1) lane-broadcast
        for m in range(1, m_total):                 # static unroll, M is small
            acc = acc + x_ref[m] * w_ref[m]
        o_ref[...] = jnp.sum(acc, axis=0, keepdims=True) + bias_ref[...]

    return kernel


def _compose_coefficients(conv_weights, conv_cfgs, m_total, c_total):
    """A[m, c]: contribution of (post-normalization) input position (m, c) to
    the pooled output, i.e. the depthwise conv chain composed with the mean
    pool.  Computed by pushing a one-hot basis through the chain (tiny)."""
    eye = jnp.eye(c_total, dtype=jnp.float32)                       # (C, C)
    z = jnp.broadcast_to(eye[:, None, :], (c_total, m_total, c_total))
    for (size, stride, dilation), w in zip(conv_cfgs, conv_weights):
        l_in = z.shape[2]
        l_out = (l_in - dilation * (size - 1) - 1) // stride + 1
        assert l_out >= 1, "conv chain reduces length below 1"
        span = (l_out - 1) * stride + 1
        y = None
        for t in range(size):
            lo = t * dilation
            sl = lax.slice(z, (0, 0, lo), (z.shape[0], m_total, lo + span),
                           (1, 1, stride))
            term = sl * w[None, :, t:t + 1]
            y = term if y is None else y + term
        z = y
    l_last = z.shape[2]
    # A[m, c] = sum over output positions of channel-m map, with the pool factor.
    return jnp.transpose(jnp.sum(z, axis=2), (1, 0)) / float(m_total * l_last)


@functools.partial(jax.jit, static_argnames=("conv_cfgs",))
def confes_forward(x, conv_weights, conv_cfgs):
    """x: (B, model_size, checkpoint_size, class_size) float32.
    conv_weights[i]: (num_backbones, size_i) depthwise filters (PyTorch (M,1,S)
    squeezed).  Returns (B, class_size), matching ConFESClassifier.forward."""
    b_total, m_total, c_total, k_total = x.shape
    x = x.astype(jnp.float32)
    conv_weights = tuple(w.astype(jnp.float32) for w in conv_weights)

    # Global min-max stats over the untouched input.  Two sibling reductions in
    # one jit -> XLA multi-output fusion reads x from HBM once.
    xmin = jnp.min(x)
    xmax = jnp.max(x)
    # NOTE: like the PyTorch module, a constant input (xmax == xmin) gives inf/NaN.
    scale = 1.0 / (xmax - xmin)
    offset = -xmin * scale

    # Fold (normalization x depthwise convs x mean pool) into one (M, C) map.
    a = _compose_coefficients(conv_weights, conv_cfgs, m_total, c_total)
    w_full = (a * scale).reshape(m_total, c_total, 1)               # (M, C, 1)
    bias = (offset * jnp.sum(a)).reshape(1, 1)                      # (1, 1)

    if k_total >= 128:
        # Direct path: read the original layout, no transpose / staging copy.
        x_in = x
        bp, kp = b_total, k_total
    else:
        # Small-K fallback: merge (B, K) onto the lane axis (one packing copy);
        # column index n = b*K + k, identical to the PyTorch permute+reshape.
        x_in = jnp.transpose(x, (1, 2, 0, 3)).reshape(
            1, m_total, c_total, b_total * k_total)
        bp, kp = 1, b_total * k_total

    tk = _choose_tile_k(kp, bp)
    nk = pl.cdiv(kp, tk)
    kernel = _make_kernel(m_total)

    # Scoped-VMEM budget with headroom (v5e default is only 16 MiB; v7x has
    # 64 MiB physical): double-buffered x block + out block + tiny coeff blocks.
    block_bytes = m_total * c_total * tk * 4
    vmem_needed = 2 * block_bytes + 2 * tk * 4 + m_total * c_total * 4 + (1 << 16)
    vmem_limit = int(min(64 << 20, max(16 << 20, 2 * vmem_needed)))

    grid_spec = pltpu.PrefetchScalarGridSpec(
        num_scalar_prefetch=0,
        grid=(bp, nk),
        in_specs=[
            pl.BlockSpec((1, 1), lambda b, j: (0, 0)),                    # bias
            pl.BlockSpec((m_total, c_total, 1), lambda b, j: (0, 0, 0)),  # W
            pl.BlockSpec((None, m_total, c_total, tk),
                         lambda b, j: (b, 0, 0, j)),                      # x block
        ],
        out_specs=pl.BlockSpec((None, 1, tk), lambda b, j: (b, 0, j)),
    )

    out = pl.pallas_call(
        kernel,
        out_shape=jax.ShapeDtypeStruct((bp, 1, kp), jnp.float32),
        grid_spec=grid_spec,
        compiler_params=pltpu.CompilerParams(
            dimension_semantics=("parallel", "parallel"),
            vmem_limit_bytes=vmem_limit),
    )(bias, w_full, x_in)

    return out.reshape(b_total, k_total)


def _reference(x, conv_weights, conv_cfgs):
    """Pure-JAX mirror of the PyTorch forward (literal op order), for checking."""
    b, m, c, k = x.shape
    z = jnp.transpose(x, (0, 3, 1, 2)).reshape(b * k, m, c).astype(jnp.float32)
    z = (z - z.min()) / (z.max() - z.min())
    for (size, stride, dilation), w in zip(conv_cfgs, conv_weights):
        l_in = z.shape[2]
        l_out = (l_in - dilation * (size - 1) - 1) // stride + 1
        span = (l_out - 1) * stride + 1
        y = None
        for t in range(size):
            lo = t * dilation
            sl = lax.slice(z, (0, 0, lo), (z.shape[0], m, lo + span),
                           (1, 1, stride))
            term = sl * w[None, :, t:t + 1]
            y = term if y is None else y + term
        z = y
    z = z.reshape(b, k, m, -1)
    return jnp.mean(z, axis=(2, 3))


if __name__ == "__main__":
    def run_case(b, m, c, k, sizes, strides, dilations):
        conv_cfgs = tuple(zip(sizes, strides, dilations))
        key = jax.random.PRNGKey(0)
        kx, *kws = jax.random.split(key, 1 + len(conv_cfgs))
        x = jax.random.normal(kx, (b, m, c, k), dtype=jnp.float32)
        # Depthwise Conv1d weights: PyTorch (M, 1, size) stored squeezed as (M, size).
        conv_weights = tuple(
            jax.random.normal(kw, (m, s), dtype=jnp.float32) * 0.1
            for kw, (s, _, _) in zip(kws, conv_cfgs))

        out = jax.block_until_ready(
            confes_forward(x, conv_weights, conv_cfgs=conv_cfgs))
        ref = jax.block_until_ready(_reference(x, conv_weights, conv_cfgs))

        assert out.shape == (b, k)
        assert jnp.allclose(out, ref, atol=1e-5, rtol=1e-5), (
            f"mismatch, max abs err = {jnp.max(jnp.abs(out - ref))}")

    # Case 1: module-default small shape (B, M, C, K) = (2, 4, 16, 16)
    #         -> small-K merged-lane fallback path, single-block grid.
    run_case(2, 4, 16, 16, sizes=[3, 3], strides=[1, 1], dilations=[1, 2])

    # Case 2: lane-sized K (direct no-transpose path), ragged K (320 % 256 != 0),
    #         multi-block (2 x 2) grid, strided + dilated convs.
    run_case(2, 4, 16, 320, sizes=[3, 2], strides=[1, 2], dilations=[2, 1])

    print("KERNEL_OK")
</pallas_src>

<mosaic_0001>
module attributes {stable_mosaic.version = 11 : i64} {
  func.func @kernel(%arg0: i32, %arg1: i32, %arg2: memref<1x1xf32, #tpu.memory_space<vmem>>, %arg3: memref<4x16x1xf32, #tpu.memory_space<vmem>>, %arg4: memref<1x4x16x32xf32, #tpu.memory_space<vmem>>, %arg5: memref<1x1x32xf32, #tpu.memory_space<vmem>>) attributes {dimension_semantics = [#tpu.dimension_semantics<parallel>, #tpu.dimension_semantics<parallel>], iteration_bounds = array<i64: 1, 1>, scalar_prefetch = 0 : i64, scratch_operands = 0 : i64, tpu.core_type = #tpu.core_type<tc>, window_params = [{pipeline_mode = #tpu.pipeline_mode<synchronous>, transform_indices = @transform_0, window_bounds = array<i64: 1, 1>}, {pipeline_mode = #tpu.pipeline_mode<synchronous>, transform_indices = @transform_1, window_bounds = array<i64: 4, 16, 1>}, {transform_indices = @transform_2, window_bounds = array<i64: 1, 4, 16, 32>}, {transform_indices = @transform_3, window_bounds = array<i64: 1, 1, 32>}]} {
    %c0 = arith.constant 0 : index
    %c0_0 = arith.constant 0 : index
    %c0_1 = arith.constant 0 : index
    %c0_2 = arith.constant 0 : index
    %0 = vector.load %arg4[%c0, %c0_0, %c0_1, %c0_2] : memref<1x4x16x32xf32, #tpu.memory_space<vmem>>, vector<1x1x16x32xf32>
    %1 = vector.shape_cast %0 : vector<1x1x16x32xf32> to vector<16x32xf32>
    %c0_3 = arith.constant 0 : index
    %c0_4 = arith.constant 0 : index
    %c0_5 = arith.constant 0 : index
    %2 = vector.load %arg3[%c0_3, %c0_4, %c0_5] : memref<4x16x1xf32, #tpu.memory_space<vmem>>, vector<1x16x1xf32>
    %3 = vector.shape_cast %2 : vector<1x16x1xf32> to vector<16x1xf32>
    %4 = vector.broadcast %3 : vector<16x1xf32> to vector<16x32xf32>
    %5 = arith.mulf %1, %4 : vector<16x32xf32>
    %c0_6 = arith.constant 0 : index
    %c1 = arith.constant 1 : index
    %c0_7 = arith.constant 0 : index
    %c0_8 = arith.constant 0 : index
    %6 = vector.load %arg4[%c0_6, %c1, %c0_7, %c0_8] : memref<1x4x16x32xf32, #tpu.memory_space<vmem>>, vector<1x1x16x32xf32>
    %7 = vector.shape_cast %6 : vector<1x1x16x32xf32> to vector<16x32xf32>
    %c1_9 = arith.constant 1 : index
    %c0_10 = arith.constant 0 : index
    %c0_11 = arith.constant 0 : index
    %8 = vector.load %arg3[%c1_9, %c0_10, %c0_11] : memref<4x16x1xf32, #tpu.memory_space<vmem>>, vector<1x16x1xf32>
    %9 = vector.shape_cast %8 : vector<1x16x1xf32> to vector<16x1xf32>
    %10 = vector.broadcast %9 : vector<16x1xf32> to vector<16x32xf32>
    %11 = arith.mulf %7, %10 : vector<16x32xf32>
    %12 = arith.addf %5, %11 : vector<16x32xf32>
    %c0_12 = arith.constant 0 : index
    %c2 = arith.constant 2 : index
    %c0_13 = arith.constant 0 : index
    %c0_14 = arith.constant 0 : index
    %13 = vector.load %arg4[%c0_12, %c2, %c0_13, %c0_14] : memref<1x4x16x32xf32, #tpu.memory_space<vmem>>, vector<1x1x16x32xf32>
    %14 = vector.shape_cast %13 : vector<1x1x16x32xf32> to vector<16x32xf32>
    %c2_15 = arith.constant 2 : index
    %c0_16 = arith.constant 0 : index
    %c0_17 = arith.constant 0 : index
    %15 = vector.load %arg3[%c2_15, %c0_16, %c0_17] : memref<4x16x1xf32, #tpu.memory_space<vmem>>, vector<1x16x1xf32>
    %16 = vector.shape_cast %15 : vector<1x16x1xf32> to vector<16x1xf32>
    %17 = vector.broadcast %16 : vector<16x1xf32> to vector<16x32xf32>
    %18 = arith.mulf %14, %17 : vector<16x32xf32>
    %19 = arith.addf %12, %18 : vector<16x32xf32>
    %c0_18 = arith.constant 0 : index
    %c3 = arith.constant 3 : index
    %c0_19 = arith.constant 0 : index
    %c0_20 = arith.constant 0 : index
    %20 = vector.load %arg4[%c0_18, %c3, %c0_19, %c0_20] : memref<1x4x16x32xf32, #tpu.memory_space<vmem>>, vector<1x1x16x32xf32>
    %21 = vector.shape_cast %20 : vector<1x1x16x32xf32> to vector<16x32xf32>
    %c3_21 = arith.constant 3 : index
    %c0_22 = arith.constant 0 : index
    %c0_23 = arith.constant 0 : index
    %22 = vector.load %arg3[%c3_21, %c0_22, %c0_23] : memref<4x16x1xf32, #tpu.memory_space<vmem>>, vector<1x16x1xf32>
    %23 = vector.shape_cast %22 : vector<1x16x1xf32> to vector<16x1xf32>
    %24 = vector.broadcast %23 : vector<16x1xf32> to vector<16x32xf32>
    %25 = arith.mulf %21, %24 : vector<16x32xf32>
    %26 = arith.addf %19, %25 : vector<16x32xf32>
    %cst = arith.constant dense<0.000000e+00> : vector<32xf32>
    %27 = vector.multi_reduction <add>, %26, %cst [0] : vector<16x32xf32> to vector<32xf32>
    %28 = vector.shape_cast %27 : vector<32xf32> to vector<1x32xf32>
    %c0_24 = arith.constant 0 : index
    %c0_25 = arith.constant 0 : index
    %29 = vector.load %arg2[%c0_24, %c0_25] : memref<1x1xf32, #tpu.memory_space<vmem>>, vector<1x1xf32>
    %30 = vector.broadcast %29 : vector<1x1xf32> to vector<1x32xf32>
    %31 = arith.addf %28, %30 : vector<1x32xf32>
    %c0_26 = arith.constant 0 : index
    %c0_27 = arith.constant 0 : index
    %c0_28 = arith.constant 0 : index
    %32 = vector.load %arg5[%c0_26, %c0_27, %c0_28] : memref<1x1x32xf32, #tpu.memory_space<vmem>>, vector<1x1x32xf32>
    %33 = vector.shape_cast %32 : vector<1x1x32xf32> to vector<1x32xf32>
    %34 = vector.shape_cast %31 : vector<1x32xf32> to vector<1x1x32xf32>
    tpu.vector_store %arg5[%c0_26, %c0_27, %c0_28], %34 {strides = array<i32>} : memref<1x1x32xf32, #tpu.memory_space<vmem>>, vector<1x1x32xf32>,
    return
  }
  func.func @transform_0(%arg0: i32, %arg1: i32) -> (i32, i32) {
    %c0_i32 = arith.constant 0 : i32
    %c0_i32_0 = arith.constant 0 : i32
    %c0_i32_1 = arith.constant 0 : i32
    return %c0_i32, %c0_i32_0 : i32, i32
  }
  func.func @transform_1(%arg0: i32, %arg1: i32) -> (i32, i32, i32) {
    %c0_i32 = arith.constant 0 : i32
    %c0_i32_0 = arith.constant 0 : i32
    %c0_i32_1 = arith.constant 0 : i32
    %c0_i32_2 = arith.constant 0 : i32
    return %c0_i32, %c0_i32_0, %c0_i32_1 : i32, i32, i32
  }
  func.func @transform_2(%arg0: i32, %arg1: i32) -> (i32, i32, i32, i32) {
    %c0_i32 = arith.constant 0 : i32
    %c0_i32_0 = arith.constant 0 : i32
    %c0_i32_1 = arith.constant 0 : i32
    return %arg0, %c0_i32, %c0_i32_0, %arg1 : i32, i32, i32, i32
  }
  func.func @transform_3(%arg0: i32, %arg1: i32) -> (i32, i32, i32) {
    %c0_i32 = arith.constant 0 : i32
    %c0_i32_0 = arith.constant 0 : i32
    return %arg0, %c0_i32, %arg1 : i32, i32, i32
  }
}

</mosaic_0001>

<bundles_post_ra>
// kernel: confes_forward.1
= control target key start
LH: loop header
LB: loop body
LE: loop exit
PB: predicated region body
PF: predicated region fallthrough
CT: control target
= control target key end

     0   :  { %v132_v0 = vmov 0   ;;  %vm92_vm0 = vcmask 261120   ;;  %vm110_vm1 = vcmask 253952   ;;  %s207_s1 = inlined_call_operand.vmem [shape: f32[4,16,1], index: 1, kind: input, shape index: {}]   ;;  %s208_s0 = inlined_call_operand.<no memory space> [shape: f32[1,1], index: 0, kind: input, shape index: {}]   ;;  %s209_s2 = inlined_call_operand.vmem [shape: f32[1,4,16,32], index: 2, kind: input, shape index: {}]   ;;  %s210_s3 = inlined_call_operand.vmem [shape: f32[1,1,32], index: 3, kind: output, shape index: {}]  }
   0x1   :  { %130 = vset.pattern.permute.xlu1 %v132_v0  ;;  %129 = vset.pattern.permute.xlu0 %v132_v0  ;;  %v118_v1 = vld [vmem:[%s207_s1 + $0x10] sm:$0xff]  ;;  %v18_v2 = vld [vmem:[%s207_s1] sm:$0xff]  ;;  %v8_v3 = vstv %s208_s0  ;;  %v119_v5 = vld [vmem:[%s207_s1 + $0x18] sm:$0xff] }
   0x2   :  { %40 = vperm.xlu1 %130, %v118_v1   ;;  %22 = vperm.xlu0 %129, %v18_v2   ;;  %v122_v4 = vld [vmem:[%s207_s1 + $0x20] sm:$0xff]  ;;  %9 = vst [vmem:[#allocation2] sm:$0x1] %v8_v3  ;;  %v19_v6 = vld [vmem:[%s207_s1 + $0x8] sm:$0xff]  ;;  %v127_v8 = vld [vmem:[%s207_s1 + $0x38] sm:$0xff] }
   0x3   :  { %131 = vset.pattern.permute.xlu2 %v132_v0  ;;  %v123_v7 = vld [vmem:[%s207_s1 + $0x28] sm:$0xff]  ;;  %v126_v9 = vld [vmem:[%s207_s1 + $0x30] sm:$0xff]  ;;  %v16_v15 = vld [vmem:[%s209_s2] sm:$0xff] }
   0x4   :  { %60 = vperm.xlu2 %131, %v122_v4   ;;  %v116_v14 = vld [vmem:[%s209_s2 + $0x10] sm:$0xff]  ;;  %v117_v16 = vld [vmem:[%s209_s2 + $0x18] sm:$0xff]  ;;  %v17_v17 = vld [vmem:[%s209_s2 + $0x8] sm:$0xff] }
   0x5   :  { %v120_v24 = vld [vmem:[%s209_s2 + $0x20] sm:$0xff]  ;;  %v121_v25 = vld [vmem:[%s209_s2 + $0x28] sm:$0xff]  ;;  %v125_v30 = vld [vmem:[%s209_s2 + $0x38] sm:$0xff] }
   0x6   :  { %v124_v31 = vld [vmem:[%s209_s2 + $0x30] sm:$0xff] }
   0x9   :  { %v102_v10 = vld [vmem:[#allocation2] sm:$0x1] }
   0xa   :  { %45 = vperm.xlu1 %130, %v119_v5   ;;  %27 = vperm.xlu0 %129, %v19_v6  }
   0xc   :  { %65 = vperm.xlu2 %131, %v123_v7  }
  0x12   :  { %85 = vperm.xlu1 %130, %v127_v8   ;;  %80 = vperm.xlu0 %129, %v126_v9  }
  0x14   :  { %105 = vperm.xlu2 %131, %v102_v10  }
  0x5e   :  { %v61_v13 = vpop.permute.xlu2 %60 }
  0x5f   :  { %v68_v26 = vmul.f32 %v120_v24, %v61_v13 }
  0x66   :  { %v66_v29 = vpop.permute.xlu2 %65 }
  0x67   :  { %v69_v32 = vmul.f32 %v121_v25, %v66_v29 }
  0x6e   :  { %v106_v48 = vpop.permute.xlu2 %105 }
  0x6f   :  { %v108_v50 = vperm.slane %v106_v48, 0 }
  0x74   :  { %v41_v11 = vpop.permute.xlu1 %40  ;;  %v23_v12 = vpop.permute.xlu0 %22 }
  0x75   :  { %v48_v20 = vmul.f32 %v116_v14, %v41_v11  ;;  %v30_v21 = vmul.f32 %v23_v12, %v16_v15 }
  0x77   :  { %v50_v27 = vadd.f32 %v48_v20, %v30_v21 }
  0x79   :  { %v70_v37 = vadd.f32 %v68_v26, %v50_v27 }
  0x7c   :  { %v46_v18 = vpop.permute.xlu1 %45  ;;  %v28_v19 = vpop.permute.xlu0 %27 }
  0x7d   :  { %v49_v22 = vmul.f32 %v117_v16, %v46_v18  ;;  %v31_v23 = vmul.f32 %v28_v19, %v17_v17 }
  0x7f   :  { %v51_v28 = vadd.f32 %v49_v22, %v31_v23 }
  0x81   :  { %v71_v35 = vadd.f32 %v69_v32, %v51_v28 }
  0x84   :  { %v86_v33 = vpop.permute.xlu1 %85  ;;  %v81_v34 = vpop.permute.xlu0 %80 }
  0x85   :  { %v89_v36 = vmul.f32 %v125_v30, %v86_v33  ;;  %v88_v38 = vmul.f32 %v124_v31, %v81_v34 }
  0x87   :  { %v91_v39 = vadd.f32 %v89_v36, %v71_v35  ;;  %v90_v40 = vadd.f32 %v88_v38, %v70_v37 }
  0x89   :  { %v94_v41 = vsel %vm92_vm0, %v91_v39, 0.0  ;;  %v93_v42 = vsel %vm92_vm0, %v90_v40, 0.0 }
  0x8a   :  { %v95_v43 = vadd.f32 %v94_v41, %v93_v42 }
  0x8c   :  { %v96_v44 = vrot.slane %v95_v43, 4 }
  0x8e   :  { %v97_v45 = vadd.f32 %v96_v44, %v95_v43 }
  0x90   :  { %v98_v46 = vrot.slane %v97_v45, 2 }
  0x92   :  { %v99_v47 = vadd.f32 %v98_v46, %v97_v45 }
  0x94   :  { %v100_v49 = vrot.slane %v99_v47, 1 }
  0x96   :  { %v101_v51 = vadd.f32 %v100_v49, %v99_v47 }
  0x98   :  { %v109_v52 = vadd.f32 %v108_v50, %v101_v51 }
  0x9a   :  { %111 = vst.msk [vmem:[%s210_s3] sm:$0x1] %vm110_vm1, %v109_v52 }

</bundles_post_ra>
